<compile_context>
chip_gen: v7x
topology: tpu7x:2x2x1
jax: 0.10.0
libtpu: 0.0.40
codegen_flags: <defaults>
</compile_context>

<pallas_src>
import functools

import jax
import jax.numpy as jnp
from jax import lax
from jax.experimental import pallas as pl
from jax.experimental.pallas import tpu as pltpu


# ----------------------------------------------------------------------------- kernel
def encoder_seq_kernel(ids_ref, wv_ref, h0_ref, wb_ref, out_ref, h_scr,
                       *, E, H, O, V, B, GW):
    """One grid step == one token (for B independent streams) through the encoder.

    wb_ref rows (bf16, C = 3*GW columns, gate groups [r|z|n], [fwd|bwd] inside a group):
      [0:E)           W_ih fused (both directions)
      [E:E+GW)        W_hh block-diagonal over the GW-padded hidden
      [E+GW:E+2GW)    W1  (rows 0:2H, cols 0:H)
      [E+2GW:E+3GW)   W2  (rows 0:H,  cols 0:O)
      row E+3GW+0     gi bias  (b_ih everywhere; += b_hh for the r/z gates)
      row E+3GW+1     gh bias  (b_hh, n-gate group only)
      row E+3GW+2     b1 (cols 0:H)
      row E+3GW+3     b2 (cols 0:O)
    """
    f32, bf16 = jnp.float32, jnp.bfloat16
    H2 = 2 * H
    r_hh, r_w1, r_w2, r_b = E, E + GW, E + 2 * GW, E + 3 * GW

    step = pl.program_id(0)

    @pl.when(step == 0)
    def _():                                        # load initial hidden once
        h_scr[...] = h0_ref[...]

    # --- embedding gather: one-hot(ids) @ word_vectors on the resident VMEM table ----
    ids = ids_ref[0]                                                  # (B, 1) int32
    onehot = jnp.where(lax.broadcasted_iota(jnp.int32, (B, V), 1) == ids,
                       1.0, 0.0).astype(wv_ref.dtype)                 # (B, V)
    x = jnp.dot(onehot, wv_ref[...], preferred_element_type=f32)      # (B, E)

    h_prev = h_scr[...]                             # (B, GW) f32; lanes [2H:GW] == 0

    # --- bidirectional GRU step: both directions fused into two bf16 MXU passes ------
    gi = jnp.dot(x.astype(bf16), wb_ref[0:E, :], preferred_element_type=f32)
    gi = gi + wb_ref[r_b:r_b + 1, :].astype(f32)    # b_ih (+ b_hh for r/z), added once
    gh = jnp.dot(h_prev.astype(bf16), wb_ref[r_hh:r_hh + GW, :],
                 preferred_element_type=f32)

    r = jax.nn.sigmoid(gi[:, 0:GW] + gh[:, 0:GW])          # 128-lane aligned gate slices
    z = jax.nn.sigmoid(gi[:, GW:2 * GW] + gh[:, GW:2 * GW])
    bhh_n = wb_ref[r_b + 1:r_b + 2, 2 * GW:3 * GW].astype(f32)
    n = jnp.tanh(gi[:, 2 * GW:3 * GW] + r * (gh[:, 2 * GW:3 * GW] + bhh_n))
    h_new = (1.0 - z) * n + z * h_prev                      # (B, GW); pad lanes stay 0
    h_scr[...] = h_new                                      # carry to next grid step

    # --- head: out_1 -> relu -> dropout(eval) -> out_2 -> sigmoid ---------------------
    o1 = jnp.dot(h_new.astype(bf16), wb_ref[r_w1:r_w1 + GW, 0:GW],
                 preferred_element_type=f32)
    o1 = jnp.maximum(o1 + wb_ref[r_b + 2:r_b + 3, 0:GW].astype(f32), 0.0)
    # TODO(synk): training-mode dropout (p=0.2) omitted; eval-mode identity is used.
    o2 = jnp.dot(o1.astype(bf16), wb_ref[r_w2:r_w2 + GW, 0:GW],
                 preferred_element_type=f32)
    out = jax.nn.sigmoid(o2 + wb_ref[r_b + 3:r_b + 4, 0:GW].astype(f32))

    # --- single lane-dense (B, 2*GW) store: [ h_new_padded | head_out_padded ] --------
    out_ref[0] = jnp.concatenate([h_new, out], axis=1)


# ----------------------------------------------------------------------------- wrappers
def encoder_forward_seq(token_ids, hidden0, packed):
    """Run n_steps encoder steps for B independent streams in one pallas_call.

    token_ids: (n_steps, B) int32; hidden0: (2, B, H) f32.
    Returns (gru_out (n_steps,B,2H), hidden (2,B,H), out (n_steps,B,O))."""
    wv, wb = packed["word_vectors"], packed["WB"]
    V, E = wv.shape
    H, O, GW = packed["H"], packed["O"], packed["GW"]
    H2 = 2 * H
    n_steps, B = token_ids.shape
    OUT_W = 2 * GW

    ids = token_ids.astype(jnp.int32).reshape(n_steps, B, 1)
    h0 = jnp.concatenate([hidden0[0], hidden0[1]], axis=1)          # (B, 2H) [fwd|bwd]
    h0 = jnp.pad(h0, ((0, 0), (0, GW - H2)))                         # lane-pad to GW

    kernel = functools.partial(encoder_seq_kernel, E=E, H=H, O=O, V=V, B=B, GW=GW)

    slab = pl.pallas_call(
        kernel,
        out_shape=jax.ShapeDtypeStruct((n_steps, B, OUT_W), jnp.float32),
        grid_spec=pltpu.PrefetchScalarGridSpec(
            num_scalar_prefetch=0,
            grid=(n_steps,),
            in_specs=[
                pl.BlockSpec((1, B, 1), lambda t: (t, 0, 0)),        # token ids of step t
                pl.BlockSpec(wv.shape, lambda t: (0, 0)),            # resident embed table
                pl.BlockSpec((B, GW), lambda t: (0, 0)),             # initial hidden
                pl.BlockSpec(wb.shape, lambda t: (0, 0)),            # resident packed weights
            ],
            out_specs=pl.BlockSpec((1, B, OUT_W), lambda t: (t, 0, 0)),
            scratch_shapes=[pltpu.VMEM((B, GW), jnp.float32)],        # carried hidden
        ),
        compiler_params=pltpu.CompilerParams(
            dimension_semantics=("arbitrary",)),                      # steps are sequential
    )(ids, wv, h0, wb)

    gru_out = slab[:, :, 0:H2]
    out = slab[:, :, GW:GW + O]
    h_last = slab[-1, :, 0:H2]
    hidden = jnp.stack([h_last[:, 0:H], h_last[:, H:H2]], axis=0)    # (2, B, H)
    return gru_out, hidden, out


def encoder_forward(token_id, hidden, packed):
    """PyTorch-interface single-token step: hidden (2,1,H) -> (output, hidden, out)."""
    H, O = packed["H"], packed["O"]
    ids = jnp.asarray(token_id, jnp.int32).reshape(1, 1)
    gru_out, hid, out = encoder_forward_seq(ids, hidden, packed)
    return gru_out.reshape(1, 1, 2 * H), hid, out.reshape(1, O)


# ----------------------------------------------------------------------------- params
def make_params(key, vocab, embed, hidden, output):
    """'Natural' (PyTorch-layout, transposed) params; gate order [r|z|n] per direction."""
    ks = jax.random.split(key, 9)
    s = 0.1
    return {
        "word_vectors": jax.random.normal(ks[0], (vocab, embed), jnp.float32) * s,
        "W_ih_T": jax.random.normal(ks[1], (2, embed, 3 * hidden), jnp.float32) * s,
        "W_hh_T": jax.random.normal(ks[2], (2, hidden, 3 * hidden), jnp.float32) * s,
        "b_ih": jax.random.normal(ks[3], (2, 3 * hidden), jnp.float32) * s,
        "b_hh": jax.random.normal(ks[4], (2, 3 * hidden), jnp.float32) * s,
        "W1_T": jax.random.normal(ks[5], (2 * hidden, hidden), jnp.float32) * s,
        "b1": jax.random.normal(ks[6], (1, hidden), jnp.float32) * s,
        "W2_T": jax.random.normal(ks[7], (hidden, output), jnp.float32) * s,
        "b2": jax.random.normal(ks[8], (1, output), jnp.float32) * s,
    }


def pack_params(p, weight_dtype=jnp.bfloat16):
    """Pack all weights/biases into one (R, 3*GW) bf16 buffer (single resident DMA)."""
    wv = p["word_vectors"]
    V, E = wv.shape
    H = p["W_hh_T"].shape[1]
    O = p["W2_T"].shape[1]
    H2 = 2 * H
    GW = ((H2 + 127) // 128) * 128          # 128-lane-aligned gate-group width
    C = 3 * GW
    assert O <= GW and H <= GW

    def gate_cols(w_f, w_b, rows):
        out = jnp.zeros((rows, C), jnp.float32)
        for g in range(3):
            out = out.at[:, g * GW:g * GW + H].set(w_f[:, g * H:(g + 1) * H])
            out = out.at[:, g * GW + H:g * GW + H2].set(w_b[:, g * H:(g + 1) * H])
        return out

    w_ih = gate_cols(p["W_ih_T"][0], p["W_ih_T"][1], E)                    # (E, C)

    # Block-diagonal W_hh over the GW-padded hidden [h_fwd | h_bwd | 0...].
    w_hh = jnp.zeros((GW, C), jnp.float32)
    for g in range(3):
        w_hh = w_hh.at[0:H, g * GW:g * GW + H].set(p["W_hh_T"][0][:, g * H:(g + 1) * H])
        w_hh = w_hh.at[H:H2, g * GW + H:g * GW + H2].set(
            p["W_hh_T"][1][:, g * H:(g + 1) * H])

    def gate_bias(b_f, b_b, gates):
        out = jnp.zeros((C,), jnp.float32)
        for g in gates:
            out = out.at[g * GW:g * GW + H].set(b_f[g * H:(g + 1) * H])
            out = out.at[g * GW + H:g * GW + H2].set(b_b[g * H:(g + 1) * H])
        return out

    # r/z biases (b_ih + b_hh) pre-folded into one row; n-gate b_hh kept separate
    # (it is scaled by r inside the GRU cell).  NOTE: this reassociates FP sums vs torch.
    gi_bias = (gate_bias(p["b_ih"][0], p["b_ih"][1], (0, 1, 2))
               + gate_bias(p["b_hh"][0], p["b_hh"][1], (0, 1)))
    gh_bias = gate_bias(p["b_hh"][0], p["b_hh"][1], (2,))

    w1 = jnp.zeros((GW, C), jnp.float32).at[0:H2, 0:H].set(p["W1_T"])
    w2 = jnp.zeros((GW, C), jnp.float32).at[0:H, 0:O].set(p["W2_T"])
    b1 = jnp.zeros((C,), jnp.float32).at[0:H].set(p["b1"][0])
    b2 = jnp.zeros((C,), jnp.float32).at[0:O].set(p["b2"][0])

    wb = jnp.concatenate(
        [w_ih, w_hh, w1, w2, gi_bias[None], gh_bias[None], b1[None], b2[None]], axis=0)
    pad = (-wb.shape[0]) % 16               # keep bf16 sublane tiles whole
    if pad:
        wb = jnp.concatenate([wb, jnp.zeros((pad, C), jnp.float32)], axis=0)

    return {"word_vectors": wv.astype(weight_dtype), "WB": wb.astype(weight_dtype),
            "V": V, "E": E, "H": H, "O": O, "GW": GW}


# ----------------------------------------------------------------------------- reference
def encoder_step_ref(token_id, hidden, p):
    """Plain-JAX single-token reference (f32, natural params), PyTorch semantics."""
    H = hidden.shape[-1]
    x = p["word_vectors"][token_id][None, :]
    hs = []
    for d in range(2):
        h_prev = hidden[d]                                   # (1, H)
        gi = x @ p["W_ih_T"][d] + p["b_ih"][d]
        gh = h_prev @ p["W_hh_T"][d] + p["b_hh"][d]
        r = jax.nn.sigmoid(gi[:, 0:H] + gh[:, 0:H])
        z = jax.nn.sigmoid(gi[:, H:2 * H] + gh[:, H:2 * H])
        n = jnp.tanh(gi[:, 2 * H:3 * H] + r * gh[:, 2 * H:3 * H])
        hs.append((1.0 - z) * n + z * h_prev)
    gru_out = jnp.concatenate(hs, axis=1)                    # (1, 2H)
    o = jnp.maximum(gru_out @ p["W1_T"] + p["b1"], 0.0)
    o = jax.nn.sigmoid(o @ p["W2_T"] + p["b2"])
    return gru_out, jnp.stack(hs, axis=0), o


# ----------------------------------------------------------------------------- main
if __name__ == "__main__":
    VOCAB, EMBED, HIDDEN, OUTPUT = 20, 16, 32, 8
    B, N_STEPS = 8, 3

    key = jax.random.PRNGKey(0)
    nat = make_params(key, VOCAB, EMBED, HIDDEN, OUTPUT)
    packed = pack_params(nat)

    token_ids = jax.random.randint(jax.random.fold_in(key, 1), (N_STEPS, B),
                                   0, VOCAB, dtype=jnp.int32)
    hidden0 = jnp.zeros((2, B, HIDDEN), jnp.float32)         # == initHidden() per stream

    # Batched, weight-resident multi-step call.
    gru_out, hidden_T, outs = encoder_forward_seq(token_ids, hidden0, packed)
    jax.block_until_ready((gru_out, hidden_T, outs))
    assert gru_out.shape == (N_STEPS, B, 2 * HIDDEN)
    assert hidden_T.shape == (2, B, HIDDEN)
    assert outs.shape == (N_STEPS, B, OUTPUT)

    # Single-token, PyTorch-shaped interface (B = 1).
    o1_out, o1_hid, o1_y = encoder_forward(
        token_ids[0, 0], jnp.zeros((2, 1, HIDDEN), jnp.float32), packed)
    jax.block_until_ready((o1_out, o1_hid, o1_y))
    assert o1_out.shape == (1, 1, 2 * HIDDEN)
    assert o1_hid.shape == (2, 1, HIDDEN)
    assert o1_y.shape == (1, OUTPUT)

    # Correctness vs f32 reference (bf16 weights -> loose tolerance).
    TOL = dict(atol=2e-2, rtol=2e-2)
    for b in range(B):
        h = jnp.zeros((2, 1, HIDDEN), jnp.float32)
        for t in range(N_STEPS):
            o_ref, h, y_ref = encoder_step_ref(int(token_ids[t, b]), h, nat)
            assert jnp.allclose(gru_out[t, b][None, :], o_ref, **TOL)
            assert jnp.allclose(outs[t, b][None, :], y_ref, **TOL)
        assert jnp.allclose(hidden_T[:, b:b + 1, :], h, **TOL)

    o_ref, h_ref, y_ref = encoder_step_ref(
        int(token_ids[0, 0]), jnp.zeros((2, 1, HIDDEN), jnp.float32), nat)
    assert jnp.allclose(o1_out[0], o_ref, **TOL)
    assert jnp.allclose(o1_hid, h_ref, **TOL)
    assert jnp.allclose(o1_y, y_ref, **TOL)

    assert bool(jnp.all((outs >= 0.0) & (outs <= 1.0)))
    print("KERNEL_OK")
</pallas_src>

<mosaic_0001>
module attributes {stable_mosaic.version = 11 : i64} {
  func.func @encoder_seq_kernel(%arg0: i32, %arg1: memref<1x8x1xi32, #tpu.memory_space<vmem>>, %arg2: memref<20x16xbf16, #tpu.memory_space<vmem>>, %arg3: memref<8x128xf32, #tpu.memory_space<vmem>>, %arg4: memref<416x384xbf16, #tpu.memory_space<vmem>>, %arg5: memref<1x8x256xf32, #tpu.memory_space<vmem>>, %arg6: memref<8x128xf32, #tpu.memory_space<vmem>>) attributes {dimension_semantics = [#tpu.dimension_semantics<arbitrary>], iteration_bounds = array<i64: 3>, scalar_prefetch = 0 : i64, scratch_operands = 1 : i64, tpu.core_type = #tpu.core_type<tc>, window_params = [{transform_indices = @transform_0, window_bounds = array<i64: 1, 8, 1>}, {pipeline_mode = #tpu.pipeline_mode<synchronous>, transform_indices = @transform_1, window_bounds = array<i64: 20, 16>}, {pipeline_mode = #tpu.pipeline_mode<synchronous>, transform_indices = @transform_2, window_bounds = array<i64: 8, 128>}, {pipeline_mode = #tpu.pipeline_mode<synchronous>, transform_indices = @transform_3, window_bounds = array<i64: 416, 384>}, {transform_indices = @transform_4, window_bounds = array<i64: 1, 8, 256>}]} {
    %c0_i32 = arith.constant 0 : i32
    %0 = arith.cmpi eq, %arg0, %c0_i32 : i32
    %1 = arith.extui %0 : i1 to i32
    %c0_i32_0 = arith.constant 0 : i32
    %2 = arith.cmpi ne, %1, %c0_i32_0 : i32
    scf.if %2 {
      %c0_31 = arith.constant 0 : index
      %c0_32 = arith.constant 0 : index
      %81 = vector.load %arg3[%c0_31, %c0_32] : memref<8x128xf32, #tpu.memory_space<vmem>>, vector<8x128xf32>
      %c0_33 = arith.constant 0 : index
      %c0_34 = arith.constant 0 : index
      %82 = vector.load %arg6[%c0_33, %c0_34] : memref<8x128xf32, #tpu.memory_space<vmem>>, vector<8x128xf32>
      tpu.vector_store %arg6[%c0_33, %c0_34], %81 {strides = array<i32>} : memref<8x128xf32, #tpu.memory_space<vmem>>, vector<8x128xf32>,
    } else {
    }
    %c0 = arith.constant 0 : index
    %c0_1 = arith.constant 0 : index
    %c0_2 = arith.constant 0 : index
    %3 = vector.load %arg1[%c0, %c0_1, %c0_2] : memref<1x8x1xi32, #tpu.memory_space<vmem>>, vector<1x8x1xi32>
    %4 = vector.shape_cast %3 : vector<1x8x1xi32> to vector<8x1xi32>
    %5 = tpu.iota {dimensions = array<i32: 1>} : vector<8x20xi32>
    %6 = vector.broadcast %4 : vector<8x1xi32> to vector<8x20xi32>
    %7 = arith.cmpi eq, %5, %6 : vector<8x20xi32>
    %cst = arith.constant 1.000000e+00 : f32
    %cst_3 = arith.constant 0.000000e+00 : f32
    %8 = vector.broadcast %cst : f32 to vector<8x20xf32>
    %9 = vector.broadcast %cst_3 : f32 to vector<8x20xf32>
    %10 = arith.select %7, %8, %9 : vector<8x20xi1>, vector<8x20xf32>
    %11 = arith.truncf %10 : vector<8x20xf32> to vector<8x20xbf16>
    %c0_4 = arith.constant 0 : index
    %c0_5 = arith.constant 0 : index
    %12 = vector.load %arg2[%c0_4, %c0_5] : memref<20x16xbf16, #tpu.memory_space<vmem>>, vector<20x16xbf16>
    %cst_6 = arith.constant dense<0.000000e+00> : vector<8x16xf32>
    %13 = tpu.matmul %11, %12, %cst_6 {dimension_numbers = #tpu.dot_dimension_numbers<[1], [0], [0], [1], [0, 0, 1, 1], [], []>} : vector<8x20xbf16>, vector<20x16xbf16>, vector<8x16xf32> -> vector<8x16xf32>
    %c0_7 = arith.constant 0 : index
    %c0_8 = arith.constant 0 : index
    %14 = vector.load %arg6[%c0_7, %c0_8] : memref<8x128xf32, #tpu.memory_space<vmem>>, vector<8x128xf32>
    %15 = arith.truncf %13 : vector<8x16xf32> to vector<8x16xbf16>
    %c0_9 = arith.constant 0 : index
    %c0_10 = arith.constant 0 : index
    %16 = vector.load %arg4[%c0_9, %c0_10] : memref<416x384xbf16, #tpu.memory_space<vmem>>, vector<16x384xbf16>
    %cst_11 = arith.constant dense<0.000000e+00> : vector<8x384xf32>
    %17 = tpu.matmul %15, %16, %cst_11 {dimension_numbers = #tpu.dot_dimension_numbers<[1], [0], [0], [1], [0, 0, 1, 1], [], []>} : vector<8x16xbf16>, vector<16x384xbf16>, vector<8x384xf32> -> vector<8x384xf32>
    %c400 = arith.constant 400 : index
    %c0_12 = arith.constant 0 : index
    %18 = vector.load %arg4[%c400, %c0_12] : memref<416x384xbf16, #tpu.memory_space<vmem>>, vector<1x384xbf16>
    %19 = arith.extf %18 : vector<1x384xbf16> to vector<1x384xf32>
    %20 = vector.broadcast %19 : vector<1x384xf32> to vector<8x384xf32>
    %21 = arith.addf %17, %20 : vector<8x384xf32>
    %22 = arith.truncf %14 : vector<8x128xf32> to vector<8x128xbf16>
    %c16 = arith.constant 16 : index
    %c0_13 = arith.constant 0 : index
    %23 = vector.load %arg4[%c16, %c0_13] : memref<416x384xbf16, #tpu.memory_space<vmem>>, vector<128x384xbf16>
    %cst_14 = arith.constant dense<0.000000e+00> : vector<8x384xf32>
    %24 = tpu.matmul %22, %23, %cst_14 {dimension_numbers = #tpu.dot_dimension_numbers<[1], [0], [0], [1], [0, 0, 1, 1], [], []>} : vector<8x128xbf16>, vector<128x384xbf16>, vector<8x384xf32> -> vector<8x384xf32>
    %25 = vector.extract_strided_slice %21 {offsets = [0, 0], sizes = [8, 128], strides = [1, 1]} : vector<8x384xf32> to vector<8x128xf32>
    %26 = vector.extract_strided_slice %24 {offsets = [0, 0], sizes = [8, 128], strides = [1, 1]} : vector<8x384xf32> to vector<8x128xf32>
    %27 = arith.addf %25, %26 : vector<8x128xf32>
    %28 = arith.negf %27 : vector<8x128xf32>
    %29 = math.exp %28 : vector<8x128xf32>
    %cst_15 = arith.constant 1.000000e+00 : f32
    %30 = vector.broadcast %cst_15 : f32 to vector<8x128xf32>
    %31 = arith.addf %30, %29 : vector<8x128xf32>
    %32 = arith.divf %30, %31 : vector<8x128xf32>
    %33 = vector.extract_strided_slice %21 {offsets = [0, 128], sizes = [8, 128], strides = [1, 1]} : vector<8x384xf32> to vector<8x128xf32>
    %34 = vector.extract_strided_slice %24 {offsets = [0, 128], sizes = [8, 128], strides = [1, 1]} : vector<8x384xf32> to vector<8x128xf32>
    %35 = arith.addf %33, %34 : vector<8x128xf32>
    %36 = arith.negf %35 : vector<8x128xf32>
    %37 = math.exp %36 : vector<8x128xf32>
    %cst_16 = arith.constant 1.000000e+00 : f32
    %38 = vector.broadcast %cst_16 : f32 to vector<8x128xf32>
    %39 = arith.addf %38, %37 : vector<8x128xf32>
    %40 = arith.divf %38, %39 : vector<8x128xf32>
    %c401 = arith.constant 401 : index
    %c256 = arith.constant 256 : index
    %41 = vector.load %arg4[%c401, %c256] : memref<416x384xbf16, #tpu.memory_space<vmem>>, vector<1x128xbf16>
    %42 = arith.extf %41 : vector<1x128xbf16> to vector<1x128xf32>
    %43 = vector.extract_strided_slice %21 {offsets = [0, 256], sizes = [8, 128], strides = [1, 1]} : vector<8x384xf32> to vector<8x128xf32>
    %44 = vector.extract_strided_slice %24 {offsets = [0, 256], sizes = [8, 128], strides = [1, 1]} : vector<8x384xf32> to vector<8x128xf32>
    %45 = vector.broadcast %42 : vector<1x128xf32> to vector<8x128xf32>
    %46 = arith.addf %44, %45 : vector<8x128xf32>
    %47 = arith.mulf %32, %46 : vector<8x128xf32>
    %48 = arith.addf %43, %47 : vector<8x128xf32>
    %49 = math.tanh %48 : vector<8x128xf32>
    %cst_17 = arith.constant 1.000000e+00 : f32
    %50 = vector.broadcast %cst_17 : f32 to vector<8x128xf32>
    %51 = arith.subf %50, %40 : vector<8x128xf32>
    %52 = arith.mulf %51, %49 : vector<8x128xf32>
    %53 = arith.mulf %40, %14 : vector<8x128xf32>
    %54 = arith.addf %52, %53 : vector<8x128xf32>
    %c0_18 = arith.constant 0 : index
    %c0_19 = arith.constant 0 : index
    %55 = vector.load %arg6[%c0_18, %c0_19] : memref<8x128xf32, #tpu.memory_space<vmem>>, vector<8x128xf32>
    tpu.vector_store %arg6[%c0_18, %c0_19], %54 {strides = array<i32>} : memref<8x128xf32, #tpu.memory_space<vmem>>, vector<8x128xf32>,
    %56 = arith.truncf %54 : vector<8x128xf32> to vector<8x128xbf16>
    %c144 = arith.constant 144 : index
    %c0_20 = arith.constant 0 : index
    %57 = vector.load %arg4[%c144, %c0_20] : memref<416x384xbf16, #tpu.memory_space<vmem>>, vector<128x128xbf16>
    %cst_21 = arith.constant dense<0.000000e+00> : vector<8x128xf32>
    %58 = tpu.matmul %56, %57, %cst_21 {dimension_numbers = #tpu.dot_dimension_numbers<[1], [0], [0], [1], [0, 0, 1, 1], [], []>} : vector<8x128xbf16>, vector<128x128xbf16>, vector<8x128xf32> -> vector<8x128xf32>
    %c402 = arith.constant 402 : index
    %c0_22 = arith.constant 0 : index
    %59 = vector.load %arg4[%c402, %c0_22] : memref<416x384xbf16, #tpu.memory_space<vmem>>, vector<1x128xbf16>
    %60 = arith.extf %59 : vector<1x128xbf16> to vector<1x128xf32>
    %61 = vector.broadcast %60 : vector<1x128xf32> to vector<8x128xf32>
    %62 = arith.addf %58, %61 : vector<8x128xf32>
    %cst_23 = arith.constant 0.000000e+00 : f32
    %63 = vector.broadcast %cst_23 : f32 to vector<8x128xf32>
    %64 = arith.maximumf %62, %63 : vector<8x128xf32>
    %65 = arith.truncf %64 : vector<8x128xf32> to vector<8x128xbf16>
    %c272 = arith.constant 272 : index
    %c0_24 = arith.constant 0 : index
    %66 = vector.load %arg4[%c272, %c0_24] : memref<416x384xbf16, #tpu.memory_space<vmem>>, vector<128x128xbf16>
    %cst_25 = arith.constant dense<0.000000e+00> : vector<8x128xf32>
    %67 = tpu.matmul %65, %66, %cst_25 {dimension_numbers = #tpu.dot_dimension_numbers<[1], [0], [0], [1], [0, 0, 1, 1], [], []>} : vector<8x128xbf16>, vector<128x128xbf16>, vector<8x128xf32> -> vector<8x128xf32>
    %c403 = arith.constant 403 : index
    %c0_26 = arith.constant 0 : index
    %68 = vector.load %arg4[%c403, %c0_26] : memref<416x384xbf16, #tpu.memory_space<vmem>>, vector<1x128xbf16>
    %69 = arith.extf %68 : vector<1x128xbf16> to vector<1x128xf32>
    %70 = vector.broadcast %69 : vector<1x128xf32> to vector<8x128xf32>
    %71 = arith.addf %67, %70 : vector<8x128xf32>
    %72 = arith.negf %71 : vector<8x128xf32>
    %73 = math.exp %72 : vector<8x128xf32>
    %cst_27 = arith.constant 1.000000e+00 : f32
    %74 = vector.broadcast %cst_27 : f32 to vector<8x128xf32>
    %75 = arith.addf %74, %73 : vector<8x128xf32>
    %76 = arith.divf %74, %75 : vector<8x128xf32>
    %77 = tpu.concatenate %54, %76 in 1 : vector<8x128xf32>, vector<8x128xf32> -> vector<8x256xf32>
    %c0_28 = arith.constant 0 : index
    %c0_29 = arith.constant 0 : index
    %c0_30 = arith.constant 0 : index
    %78 = vector.load %arg5[%c0_28, %c0_29, %c0_30] : memref<1x8x256xf32, #tpu.memory_space<vmem>>, vector<1x8x256xf32>
    %79 = vector.shape_cast %78 : vector<1x8x256xf32> to vector<8x256xf32>
    %80 = vector.shape_cast %77 : vector<8x256xf32> to vector<1x8x256xf32>
    tpu.vector_store %arg5[%c0_28, %c0_29, %c0_30], %80 {strides = array<i32>} : memref<1x8x256xf32, #tpu.memory_space<vmem>>, vector<1x8x256xf32>,
    return
  }
  func.func @transform_0(%arg0: i32) -> (i32, i32, i32) {
    %c0_i32 = arith.constant 0 : i32
    %c0_i32_0 = arith.constant 0 : i32
    %c0_i32_1 = arith.constant 0 : i32
    return %arg0, %c0_i32, %c0_i32_0 : i32, i32, i32
  }
  func.func @transform_1(%arg0: i32) -> (i32, i32) {
    %c0_i32 = arith.constant 0 : i32
    %c0_i32_0 = arith.constant 0 : i32
    %c0_i32_1 = arith.constant 0 : i32
    return %c0_i32, %c0_i32_0 : i32, i32
  }
  func.func @transform_2(%arg0: i32) -> (i32, i32) {
    %c0_i32 = arith.constant 0 : i32
    %c0_i32_0 = arith.constant 0 : i32
    %c0_i32_1 = arith.constant 0 : i32
    return %c0_i32, %c0_i32_0 : i32, i32
  }
  func.func @transform_3(%arg0: i32) -> (i32, i32) {
    %c0_i32 = arith.constant 0 : i32
    %c0_i32_0 = arith.constant 0 : i32
    %c0_i32_1 = arith.constant 0 : i32
    return %c0_i32, %c0_i32_0 : i32, i32
  }
  func.func @transform_4(%arg0: i32) -> (i32, i32, i32) {
    %c0_i32 = arith.constant 0 : i32
    %c0_i32_0 = arith.constant 0 : i32
    %c0_i32_1 = arith.constant 0 : i32
    return %arg0, %c0_i32, %c0_i32_0 : i32, i32, i32
  }
}

</mosaic_0001>

<bundles_post_ra>
// kernel: tpu_custom_call.1
= control target key start
LH: loop header
LB: loop body
LE: loop exit
PB: predicated region body
PF: predicated region fallthrough
CT: control target
= control target key end

     0   :  { %9 = vsyncpa [#allocation4], 0  ;;  %s1629_s0 = inlined_call_operand.vmem [shape: s32[3,8,1], index: 0, kind: input, shape index: {}]   ;;  %s1630_s1 = inlined_call_operand.vmem [shape: bf16[20,16], index: 1, kind: input, shape index: {}]   ;;  %s1631_s2 = inlined_call_operand.vmem [shape: f32[8,128], index: 2, kind: input, shape index: {}]   ;;  %s1632_s3 = inlined_call_operand.hbm [shape: bf16[416,384], index: 3, kind: input, shape index: {}]   ;;  %s1633_s4 = inlined_call_operand.hbm [shape: f32[3,8,256], index: 4, kind: output, shape index: {}]  }
   0x1   :  { %10 = vsyncpa [#allocation5], 0 }
   0x2   :  { %12 = vsyncpa [#allocation5 + $0x1], 0  ;;  %s1422_s15 = smov 0   ;;  %s1424_s16 = smov 0  }
   0x3   :  { %s1426_s17 = smov 0   ;;  %s1428_s18 = smov 0  }
   0x4 LB: > { %s1443_s19 = sadd.s32 4294967295, %s1388_s18   ;;  %s992_s20 = sadd.s32 4294967294, %s1388_s18   ;;  %s1388_s18 = sphi %s1428_s18, %s1650_s18   ;;  %s1384_s17 = sphi %s1426_s17, %s1649_s17   ;;  %s1380_s16 = sphi %s1424_s16, %s1648_s16   ;;  %s1376_s15 = sphi %s1422_s15, %s1647_s15  }
   0x5   : > { %s1447_s21 = sadd.s32 1, %s1388_s18   ;;  %s114_s22 = sadd.s32 1, %s1384_s17 }
   0x6   : > { %s111_s23 = ssub.s32 %s1388_s18, %s1447_s21  ;;  %p124_p0 = scmp.ne.s32.totalorder %s1384_s17, %s1380_s16 }
   0x7   : > { %p112_p1 = scmp.eq.s32.totalorder %s111_s23, 0  ;;  %p125_p2 = scmp.eq.s32.totalorder %s1443_s19, 2 }
   0x8   : > { %p130_p3 = scmp.ne.s32.totalorder %s1380_s16, %s1376_s15  ;;  %p131_p4 = scmp.eq.s32.totalorder %s992_s20, 2 }
   0x9   : > { %s1458_s24 = scalar_select %p112_p1, %s1384_s17, %s114_s22  }
   0xa   : > { %p1460_p5 = por %p125_p2, %p124_p0  ;;  %p1464_p6 = por %p131_p4, %p130_p3 }
   0xb   : > { %p993_p7 = scmp.ge.s32.totalorder %s1388_s18, 1  ;;  %p138_p8 = scmp.lt.s32.totalorder %s1388_s18, 4 }
   0xc   : > { %s1637_s25 = scalar_select %p1460_p5, 1, 0 }
   0xd   : > { %s1638_s26 = scalar_select %p1464_p6, 1, 0 }
   0xe   : > { %p1634_p10 = scmp.eq.s32.totalorder %s1443_s19, 0  ;;  %p1472_p11 = pnand %p993_p7, %p138_p8 }
   0xf   : > { %s1390_s28 = smov [#allocation3]   ;;  %s1294_s7 = scalar_lea.hbm %s1632_s3, 9984 }
  0x10   : > { %s1639_s27 = scalar_select %p1472_p11, 1, 0 }
  0x11   : > { %s156_s29 = sshll.u32 %s1390_s28, 4  ;;  %p1176_p12 = pneg %p1472_p11  ;;  %s157_s29 = int_to_ptr.vmem [resolvable:$true] %s156_s29 }
  0x12   : > { %p1295_p0 = scmp.ne.s32.totalorder %s1632_s3, %s1294_s7  ;;  %p1301_p4 = scmp.lt.u32.totalorder %s1294_s7, %s1632_s3 }
  0x13   : > { %p1480_p13 = pnand %p1634_p10, %p1176_p12 }
  0x15   : > { %p1296_p1 = pneg %p1480_p13 }
  0x17   : > { %p1297_p2 = pnand %p1296_p1, %p1295_p0 }
  0x19   : > { %p1298_p3 = pneg %p1297_p2 }
  0x1b   : > { %p1303_p7 = pnand %p1301_p4, %p1298_p3 }
  0x1d   : > { %1306 = shalt.err (!%p1303_p7)
}
  0x1e   : > { %s1307_s12 = scalar_lea.vmem %s157_s29, 9984  ;;  %p1315_p10 = scmp.lt.s32.totalorder %s157_s29, %s157_s29 }
  0x1f   : > { %p1308_p8 = scmp.ne.s32.totalorder %s157_s29, %s1307_s12  ;;  %p1316_p6 = scmp.lt.s32.totalorder %s1307_s12, %s1307_s12 }
  0x21   : > { %p1310_p12 = pnand %p1308_p8, %p1296_p1  ;;  %p1317_p5 = por %p1316_p6, %p1315_p10 }
  0x23   : > { %p1311_p9 = pneg %p1310_p12 }
  0x25   : > { %p1318_p11 = pnand %p1317_p5, %p1311_p9 }
  0x27   : > { %1321 = shalt.err (!%p1318_p11)
}
  0x28   : > { %s1391_s13 = smov 192   ;;  %s1392_s14 = smov 12  }
  0x29   : > { %1179 = dma.hbm_to_vmem [thread:$0]  (!%p1480_p13), %s1632_s3, 9984, %s157_s29, [#allocation4], %s1391_s13, %s1391_s13, %s1392_s14  }
  0x2a   : > { %p1641_p0 = scmp.ne.s32.totalorder %s1639_s27, 0 }
  0x2b   : > { %p1642_p2 = scmp.eq.s32.totalorder (!%p1641_p0), %s1443_s19, 0 }
  0x2c   : > { %179 = sbr.rel (%p1641_p0) target bundleno = 1183 (0x49f), region = 36 }
  0x33   : > { %1367 = dma.done.wait (%p1642_p2), [#allocation4], 9984   ;;  %p1643_p1 = pmov %p1642_p2 }
  0x34   : > { %s201_s23 = sand.u32 1, %s1380_s16   ;;  %p204_p5 = scmp.lt.s32.totalorder %s1443_s19, 2 }
  0x35   : > { %1369 = vsyncadd (%p1643_p1), [#allocation4], 4294957312  ;;  %s998_s28 = sshll.u32 %s201_s23, 4  ;;  %p1644_p6 = scmp.ne.s32.totalorder %s1443_s19, 0 }
  0x36   : > { %s205_s30 = scalar_select %p204_p5, %s1443_s19, 2 }
  0x37   : > { %s1514_s7 = scalar_lea.vmem [#allocation6], %s998_s28  ;;  %212 = sbr.rel (%p1644_p6) target bundleno = 62 (0x3e), region = 44  ;;  %v213_v0 = vld [vmem:[%s1631_s2] sm:$0xff] (!%p1644_p6) }
  0x38   : > { %s999_s5 = sshll.u32 %s205_s30, 3  ;;  %214 = vst [vmem:[#allocation2] sm:$0xff] (!%p1644_p6), %v213_v0 }
  0x39   : > { %s207_s27 = scalar_lea.vmem %s1629_s0, %s999_s5 }
  0x3e PF: > { %v215_v1 = vld [vmem:[%s207_s27] sm:$0xff]  ;;  %v1393_v3 = vmov 0   ;;  %v1394_v4 = vmov 0.0   ;;  %vm240_vm0 = vcmask 1041408   ;;  %vm1395_vm1 = vmmov 0   ;;  %s1057_s14 = sshll.u32 %s1443_s19, 8 }
  0x3f   : > { %v1226_v2 = vld [vmem:[%s1630_s1] sm:$0xff]   ;;  %1225 = vset.pattern.permute.xlu0 %v1393_v3  ;;  %1090 = vmatprep.subr.bf16.mxu0 %v1394_v4  ;;  %v1227_v5 = vld [vmem:[%s1630_s1 + $0x8] ss:$0 sps:$4 sm:$0x33]   ;;  %v1228_v7 = vld [vmem:[#allocation3 + $0x4] ss:$12 sps:$4 sm:$0xff]   ;;  %v216_v9 = vlaneseq  ;;  %s1584_s30 = scalar_lea.hbm %s1633_s4, %s1057_s14 }
  0x40   : > { %219 = vperm.xlu0 %1225, %v215_v1   ;;  %1091 = vmatpush3.bf16.msra.mxu0 %v1226_v2  ;;  %v242_v6 = vsel %vm240_vm0, %v1227_v5, 0  ;;  %v1230_v8 = vld [vmem:[#allocation3] ss:$12 sps:$4 sm:$0xff]   ;;  %vm236_vm3 = vcmask 162816   ;;  %v1257_v15 = vld [vmem:[#allocation3 + $0x38] ss:$12 sps:$4 sm:$0xff]  }
  0x41   : > { %1092 = vmatprep.subr.bf16.mxu0 %v1394_v4  ;;  %359 = vmatprep.mubr.bf16.mxu1 %v1393_v3  ;;  %v217_v10 = vand.u32 127, %v216_v9  ;;  %v1253_v14 = vld [vmem:[#allocation3 + $0x20] ss:$12 sps:$4 sm:$0xff]   ;;  %v1258_v16 = vld [vmem:[#allocation3 + $0x50] ss:$12 sps:$4 sm:$0xff]   ;;  %vm323_vm4 = vcmask 130048  }
  0x42   : > { %1094 = vmatprep.mubr.msk.bf16.mxu0 %vm1395_vm1, %v1394_v4  ;;  %327 = vmatprep.subr.bf16.mxu1 %v1228_v7  ;;  %v1259_v17 = vld [vmem:[#allocation3 + $0x68] ss:$12 sps:$4 sm:$0xff]   ;;  %v1260_v18 = vld [vmem:[#allocation3 + $0x80] ss:$12 sps:$4 sm:$0xff]   ;;  %v1261_v19 = vld [vmem:[#allocation3 + $0x98] ss:$12 sps:$4 sm:$0xff]  }
  0x43   : > { %328 = vmatpush1.bf16.msra.mxu1 %v1230_v8  ;;  %v1262_v20 = vld [vmem:[#allocation3 + $0xb0] ss:$12 sps:$4 sm:$0xff]   ;;  %v1263_v21 = vld [vmem:[#allocation3 + $0xc8] ss:$12 sps:$4 sm:$0xff]   ;;  %v1232_v31 = vld [vmem:[#allocation3 + $0x18] ss:$12 sps:$4 sm:$0xff]  }
  0x44   : > { %1093 = vmatpush3.bf16.msra.mxu0 %v242_v6  ;;  %1098 = vmatprep.subr.bf16.mxu1 %v1394_v4  ;;  %v1546_v22 = vld [vmem:[#allocation2] sm:$0xff]  ;;  %v1231_v25 = vld [vmem:[#allocation3 + $0x8] ss:$12 sps:$4 sm:$0xff]   ;;  %v1243_v36 = vld [vmem:[#allocation3 + $0x64] ss:$12 sps:$4 sm:$0xff]   ;;  %v296_v6 = vshrl.u32 %v216_v9, 7 }
  0x45   : > { %1104 = vmatprep.subr.bf16.mxu0 %v1394_v4  ;;  %v408_v23 = vpack.c.bf16 %v1546_v22, %v1546_v22  ;;  %v1234_v28 = vld [vmem:[#allocation3 + $0x1c] ss:$12 sps:$4 sm:$0xff]   ;;  %v1237_v32 = vld [vmem:[#allocation3 + $0x34] ss:$12 sps:$4 sm:$0xff]   ;;  %v1240_v34 = vld [vmem:[#allocation3 + $0x4c] ss:$12 sps:$4 sm:$0xff]  }
  0x46   : > { %v1235_v33 = vld [vmem:[#allocation3 + $0x30] ss:$12 sps:$4 sm:$0xff]   ;;  %v1238_v35 = vld [vmem:[#allocation3 + $0x48] ss:$12 sps:$4 sm:$0xff]   ;;  %v1241_v37 = vld [vmem:[#allocation3 + $0x60] ss:$12 sps:$4 sm:$0xff]  }
  0x47   : > { %v1246_v38 = vld [vmem:[#allocation3 + $0x7c] ss:$12 sps:$4 sm:$0xff]   ;;  %v1244_v39 = vld [vmem:[#allocation3 + $0x78] ss:$12 sps:$4 sm:$0xff]   ;;  %v1249_v40 = vld [vmem:[#allocation3 + $0x94] ss:$12 sps:$4 sm:$0xff]  }
  0x48   : > { %v1247_v41 = vld [vmem:[#allocation3 + $0x90] ss:$12 sps:$4 sm:$0xff]   ;;  %v1252_v42 = vld [vmem:[#allocation3 + $0xac] ss:$12 sps:$4 sm:$0xff]   ;;  %v1250_v43 = vld [vmem:[#allocation3 + $0xa8] ss:$12 sps:$4 sm:$0xff]  }
  0x49   : > { %v1256_v44 = vld [vmem:[#allocation3 + $0xc4] ss:$12 sps:$4 sm:$0xff]   ;;  %v1254_v45 = vld [vmem:[#allocation3 + $0xc0] ss:$12 sps:$4 sm:$0xff]   ;;  %v1266_v51 = vld [vmem:[#allocation3 + $0x108] ss:$12 sps:$4 sm:$0xff]  }
  0x4a   : > { %v1264_v46 = vld [vmem:[#allocation3 + $0xd8] ss:$12 sps:$4 sm:$0xff]   ;;  %v1265_v47 = vld [vmem:[#allocation3 + $0xf0] ss:$12 sps:$4 sm:$0xff]   ;;  %v1267_v53 = vld [vmem:[#allocation3 + $0x120] ss:$12 sps:$4 sm:$0xff]  }
  0x4b   : > { %v1268_v54 = vld [vmem:[#allocation3 + $0x138] ss:$12 sps:$4 sm:$0xff]   ;;  %v1269_v55 = vld [vmem:[#allocation3 + $0x150] ss:$12 sps:$4 sm:$0xff]   ;;  %v1270_v56 = vld [vmem:[#allocation3 + $0x168] ss:$12 sps:$4 sm:$0xff]  }
  0x4c   : > { %v1271_v57 = vld [vmem:[#allocation3 + $0x180] ss:$12 sps:$4 sm:$0xff]   ;;  %v1272_v58 = vld [vmem:[#allocation3 + $0x198] ss:$12 sps:$4 sm:$0xff]   ;;  %v1273_v59 = vld [vmem:[#allocation3 + $0x1b0] ss:$12 sps:$4 sm:$0xff]  }
  0x4d   : > { %v1274_v60 = vld [vmem:[#allocation3 + $0x1c8] ss:$12 sps:$4 sm:$0xff]   ;;  %v1275_v61 = vld [vmem:[#allocation3 + $0x1e0] ss:$12 sps:$4 sm:$0xff]   ;;  %v1276_v62 = vld [vmem:[#allocation3 + $0x1f8] ss:$12 sps:$4 sm:$0xff]  }
  0x4e   : > { %v1277_v63 = vld [vmem:[#allocation3 + $0x210] ss:$12 sps:$4 sm:$0xff]   ;;  %v297_v8 = vsub.s32 0, %v296_v6  ;;  %s921_s20 = sshll.u32 %s1514_s7, 4  ;;  %s907_s5 = scalar_lea.sflag [#allocation5], %s201_s23  ;;  %s1586_s20 = int_to_ptr.vmem [resolvable:$true] %s921_s20 }
  0x4f   : > { %v290_v5 = vld [vmem:[#allocation3 + $0x258] sm:$0x11]  ;;  %s1322_s29 = scalar_lea.vmem %s1586_s20, 256  ;;  %p1645_p10 = scmp.ne.s32.totalorder %s1637_s25, 0 }
  0x50   : > { %v292_v7 = vunpack.c.l.bf16 %v290_v5  ;;  %p1323_p9 = scmp.ne.s32.totalorder %s1586_s20, %s1322_s29  ;;  %s1396_s19 = smov [#allocation6]  }
  0x51   : > { %s1326_s6 = sshll.u32 %s1396_s19, 4  ;;  %s1327_s6 = int_to_ptr.vmem [resolvable:$false] %s1326_s6 }
  0x52   : > { %p1324_p11 = pnand %p1323_p9, %p1645_p10  ;;  %s1328_s27 = scalar_lea.vmem %s1327_s6, 512 }
  0x53   : > { %p1329_p3 = scmp.lt.s32.totalorder %s1586_s20, %s1327_s6  ;;  %p1330_p4 = scmp.lt.s32.totalorder %s1328_s27, %s1322_s29 }
  0x54   : > { %p1325_p13 = pneg %p1324_p11 }
  0x55   : > { %p1331_p7 = por %p1330_p4, %p1329_p3 }
  0x57   : > { %p1332_p8 = pnand %p1331_p7, %p1325_p13 }
  0xbf   : > { %v220_v11 = vpop.permute.xlu0 %219 }
  0xc0   : > { %vm221_vm2 = vcmp.eq.s32.totalorder %v217_v10, %v220_v11  ;;  %v293_v10 = vunpack.c.h.bf16 %v290_v5  ;;  %v298_v11 = vrot.slane %v292_v7, %v297_v8 }
  0xc1   : > { %v222_v12 = vsel %vm221_vm2, 1.0, %v1394_v4 }
  0xc2   : > { %v223_v13 = vpack.c.bf16 %v222_v12, %v222_v12 }
  0xc4   : > { %1095 = vmatmul.mubr.msk.bf16.vlgmr.msra.gmra.mrb[0].mxu0 %vm236_vm3, %v223_v13  ;;  %v302_v13 = vrot.slane %v293_v10, %v297_v8 }
  0xc5   : > { %1120 = vmatprep.mubr.msk.bf16.mxu0 %vm1395_vm1, %v1394_v4  ;;  %1105 = vmatpush3.bf16.msra.mxu0 %v1253_v14 }
  0xc6   : > { %1106 = vmatprep.subr.bf16.mxu0 %v1394_v4 }
  0xc9   : > { %1107 = vmatpush3.bf16.msra.mxu0 %v1257_v15 }
  0xca   : > { %1108 = vmatprep.subr.bf16.mxu0 %v1394_v4 }
  0xcd   : > { %1109 = vmatpush3.bf16.msra.mxu0 %v1258_v16 }
  0xce   : > { %1110 = vmatprep.subr.bf16.mxu0 %v1394_v4 }
  0xd1   : > { %1111 = vmatpush3.bf16.msra.mxu0 %v1259_v17 }
  0xd2   : > { %1112 = vmatprep.subr.bf16.mxu0 %v1394_v4 }
  0xd5   : > { %1113 = vmatpush3.bf16.msra.mxu0 %v1260_v18 }
  0xd6   : > { %1114 = vmatprep.subr.bf16.mxu0 %v1394_v4 }
  0xd9   : > { %1115 = vmatpush3.bf16.msra.mxu0 %v1261_v19 }
  0xda   : > { %1116 = vmatprep.subr.bf16.mxu0 %v1394_v4 }
  0xdd   : > { %1117 = vmatpush3.bf16.msra.mxu0 %v1262_v20 }
  0xde   : > { %1118 = vmatprep.subr.bf16.mxu0 %v1394_v4 }
  0xe1   : > { %1119 = vmatpush3.bf16.msra.mxu0 %v1263_v21 }
  0xe2   : > { %1124 = vmatprep.subr.bf16.mxu0 %v1394_v4 }
  0xe4   : > { %1121 = vmatmul.mubr.bf16.vlgmr.msra.gmra.mrb[4].mxu0 %v408_v23 }
  0xe5   : > { %1140 = vmatprep.mubr.msk.bf16.mxu0 %vm1395_vm1, %v1394_v4  ;;  %1125 = vmatpush3.bf16.msra.mxu0 %v1264_v46  ;;  %v698_v46 = vsub.s32 2, %v296_v6 }
  0xe6   : > { %1126 = vmatprep.subr.bf16.mxu0 %v1394_v4 }
  0xe9   : > { %1127 = vmatpush3.bf16.msra.mxu0 %v1265_v47 }
  0xea   : > { %1128 = vmatprep.subr.bf16.mxu0 %v1394_v4 }
  0xed   : > { %1129 = vmatpush3.bf16.msra.mxu0 %v1266_v51 }
  0xee   : > { %1130 = vmatprep.subr.bf16.mxu0 %v1394_v4 }
  0xf1   : > { %1131 = vmatpush3.bf16.msra.mxu0 %v1267_v53 }
  0xf2   : > { %1132 = vmatprep.subr.bf16.mxu0 %v1394_v4 }
  0xf5   : > { %1133 = vmatpush3.bf16.msra.mxu0 %v1268_v54  ;;  %v808_v54 = vsub.s32 3, %v296_v6 }
  0xf6   : > { %1134 = vmatprep.subr.bf16.mxu0 %v1394_v4 }
  0xf9   : > { %1135 = vmatpush3.bf16.msra.mxu0 %v1269_v55 }
  0xfa   : > { %1136 = vmatprep.subr.bf16.mxu0 %v1394_v4 }
  0xfd   : > { %1137 = vmatpush3.bf16.msra.mxu0 %v1270_v56 }
  0xfe   : > { %1138 = vmatprep.subr.bf16.mxu0 %v1394_v4 }
 0x101   : > { %1139 = vmatpush3.bf16.msra.mxu0 %v1271_v57 }
 0x197   : > { %v278_v24 = vpop.f32.mrb[0].mxu0 }
 0x198   : > { %v285_v26 = vpack.c.bf16 %v278_v24, %v278_v24  ;;  %v1096_v27 = vpop.f32.mrb[1].mxu0 }
 0x199   : > { %v281_v29 = vpop.f32.mrb[2].mxu0 }
 0x19a   : > { %v1097_v30 = vpop.f32.mrb[3].mxu0  ;;  %1007 = vmatmul.mubr.msk.bf16.vlgmr.msra.gmra.mrb[0].mxu1 %vm323_vm4, %v285_v26 }
 0x19b   : > { %1099 = vmatpush3.bf16.msra.mxu1 %v1231_v25  ;;  %1100 = vmatprep.mubr.msk.bf16.mxu1 %vm1395_vm1, %v1394_v4  ;;  %v666_v25 = vsub.s32 1, %v296_v6 }
 0x19c   : > { %569 = vmatprep.subr.bf16.mxu1 %v1234_v28 }
 0x1a2   : > { %1101 = vmatmul.mubr.msk.bf16.vlgmr.msra.gmra.mrb[4].mxu1 %vm323_vm4, %v285_v26 }
 0x1a3   : > { %570 = vmatpush1.bf16.msra.mxu1 %v1232_v31  ;;  %601 = vmatprep.mubr.bf16.mxu1 %v1393_v3 }
 0x1a4   : > { %571 = vmatprep.subr.bf16.mxu1 %v1237_v32 }
 0x1a7   : > { %572 = vmatpush1.bf16.msra.mxu1 %v1235_v33 }
 0x1a8   : > { %573 = vmatprep.subr.bf16.mxu1 %v1240_v34 }
 0x1ab   : > { %574 = vmatpush1.bf16.msra.mxu1 %v1238_v35 }
 0x1ac   : > { %575 = vmatprep.subr.bf16.mxu1 %v1243_v36 }
 0x1af   : > { %576 = vmatpush1.bf16.msra.mxu1 %v1241_v37 }
 0x1b0   : > { %577 = vmatprep.subr.bf16.mxu1 %v1246_v38 }
 0x1b3   : > { %578 = vmatpush1.bf16.msra.mxu1 %v1244_v39 }
 0x1b4   : > { %579 = vmatprep.subr.bf16.mxu1 %v1249_v40 }
 0x1b7   : > { %580 = vmatpush1.bf16.msra.mxu1 %v1247_v41  ;;  %v1560_v48 = vpop.f32.mrb[4].mxu0 }
 0x1b8   : > { %581 = vmatprep.subr.bf16.mxu1 %v1252_v42  ;;  %v1122_v49 = vpop.f32.mrb[5].mxu0  ;;  %v1278_v42 = vld [vmem:[#allocation3 + $0x228] ss:$12 sps:$4 sm:$0xff]  }
 0x1b9   : > { %v647_v50 = vpop.f32.mrb[6].mxu0 }
 0x1ba   : > { %v1123_v52 = vpop.f32.mrb[7].mxu0 }
 0x1bb   : > { %582 = vmatpush1.bf16.msra.mxu1 %v1250_v43  ;;  %v1279_v43 = vld [vmem:[#allocation3 + $0x240] ss:$12 sps:$4 sm:$0xff]  }
 0x1bc   : > { %583 = vmatprep.subr.bf16.mxu1 %v1256_v44  ;;  %v694_v44 = vld [vmem:[#allocation3 + $0x258] sm:$0x2] }
 0x1bf   : > { %584 = vmatpush1.bf16.msra.mxu1 %v1254_v45  ;;  %v695_v45 = vunpack.c.l.bf16 %v694_v44 }
 0x1c0   : > { %1144 = vmatprep.subr.bf16.mxu1 %v1394_v4 }
 0x1c1   : > { %v699_v47 = vrot.slane %v695_v45, %v698_v46  ;;  %v809_v55 = vrot.slane %v695_v45, %v808_v54 }
 0x1c2   : > { %602 = vmatmul.mubr.bf16.vlgmr.msra.gmra.mrb[0].mxu1 %v408_v23  ;;  %v291_v23 = vld [vmem:[#allocation3 + $0x260] sm:$0x1] }
 0x1c3   : > { %1160 = vmatprep.mubr.msk.bf16.mxu1 %vm1395_vm1, %v1394_v4  ;;  %1145 = vmatpush3.bf16.msra.mxu1 %v1272_v58  ;;  %v294_v9 = vunpack.c.l.bf16 %v291_v23 }
 0x1c4   : > { %1146 = vmatprep.subr.bf16.mxu1 %v1394_v4 }
 0x1c5   : > { %v667_v26 = vrot.slane %v294_v9, %v666_v25  ;;  %v306_v28 = vrot.slane %v294_v9, %v297_v8 }
 0x1c7   : > { %1147 = vmatpush3.bf16.msra.mxu1 %v1273_v59  ;;  %v668_v30 = vadd.f32 %v667_v26, %v1560_v48 }
 0x1c8   : > { %1148 = vmatprep.subr.bf16.mxu1 %v1394_v4 }
 0x1cb   : > { %1149 = vmatpush3.bf16.msra.mxu1 %v1274_v60 }
 0x1cc   : > { %1150 = vmatprep.subr.bf16.mxu1 %v1394_v4 }
 0x1cf   : > { %1151 = vmatpush3.bf16.msra.mxu1 %v1275_v61 }
 0x1d0   : > { %1152 = vmatprep.subr.bf16.mxu1 %v1394_v4 }
 0x1d3   : > { %1153 = vmatpush3.bf16.msra.mxu1 %v1276_v62 }
 0x1d4   : > { %1154 = vmatprep.subr.bf16.mxu1 %v1394_v4 }
 0x1d7   : > { %1155 = vmatpush3.bf16.msra.mxu1 %v1277_v63 }
 0x1d8   : > { %1156 = vmatprep.subr.bf16.mxu1 %v1394_v4 }
 0x1db   : > { %1157 = vmatpush3.bf16.msra.mxu1 %v1278_v42 }
 0x1dc   : > { %1158 = vmatprep.subr.bf16.mxu1 %v1394_v4 }
 0x1df   : > { %1159 = vmatpush3.bf16.msra.mxu1 %v1279_v43 }
 0x275   : > { %v402_v0 = vpop.f32.mrb[4].mxu1 }
 0x276   : > { %v1102_v1 = vpop.f32.mrb[5].mxu1  ;;  %v403_v32 = vadd.f32 %v402_v0, %v306_v28 }
 0x277   : > { %v405_v2 = vpop.f32.mrb[6].mxu1 }
 0x278   : > { %v1103_v3 = vpop.f32.mrb[7].mxu1 }
 0x295   : > { %v603_v12 = vpop.f32.mrb[0].mxu1 }
 0x296   : > { %v1164_v14 = vadd.f32 %v603_v12, %v298_v11  ;;  %v605_v15 = vpop.f32.mrb[1].mxu1 }
 0x297   : > { %v607_v16 = vpop.f32.mrb[2].mxu1  ;;  %v1165_v19 = vadd.f32 %v605_v15, %v302_v13 }
 0x298   : > { %v1033_v17 = vmul.f32 -1.442695, %v1164_v14  ;;  %v608_v18 = vpop.f32.mrb[3].mxu1 }
 0x299   : > { %v1034_v20 = vmul.f32 -1.442695, %v1165_v19 }
 0x29a   : > { %1280 = vpow2.f32 %v1033_v17 }
 0x29b   : > { %1282 = vpow2.f32 %v1034_v20 }
 0x2a4   : > { %v1281_v21 = vpop.eup %1280 }
 0x2a5   : > { %v654_v24 = vadd.f32 1.0, %v1281_v21  ;;  %v1283_v27 = vpop.eup %1282 }
 0x2a6   : > { %v661_v29 = vadd.f32 1.0, %v1283_v27 }
 0x2a7   : > { %1284 = vrcp.f32 %v654_v24 }
 0x2a8   : > { %1286 = vrcp.f32 %v661_v29 }
 0x2b1   : > { %v1285_v31 = vpop.eup %1284 }
 0x2b2   : > { %v669_v33 = vmul.f32 %v1285_v31, %v668_v30  ;;  %v1287_v35 = vpop.eup %1286 }
 0x2b3   : > { %v672_v36 = vsub.f32 1.0, %v1287_v35  ;;  %v674_v39 = vmul.f32 %v1287_v35, %v1546_v22 }
 0x2b4   : > { %v670_v34 = vadd.f32 %v669_v33, %v403_v32 }
 0x2b6   : > { %1288 = vtanh.f32 %v670_v34 }
 0x2c0   : > { %v1289_v37 = vpop.eup %1288 }
 0x2c1   : > { %v673_v38 = vmul.f32 %v1289_v37, %v672_v36 }
 0x2c3   : > { %v675_v40 = vadd.f32 %v674_v39, %v673_v38 }
 0x2c5   : > { %676 = vst [vmem:[#allocation2] sm:$0xff] %v675_v40  ;;  %v677_v41 = vpack.c.bf16 %v675_v40, %v675_v40  ;;  %904 = vst [vmem:[%s1514_s7] sm:$0xff] %v675_v40 }
 0x2c7   : > { %1141 = vmatmul.mubr.bf16.vlgmr.msra.gmra.mrb[8].mxu0 %v677_v41 }
 0x39a   : > { %v782_v48 = vpop.f32.mrb[8].mxu0 }
 0x39b   : > { %v783_v49 = vadd.f32 %v782_v48, %v699_v47  ;;  %v1142_v50 = vpop.f32.mrb[9].mxu0 }
 0x39c   : > { %v785_v51 = vpop.f32.mrb[10].mxu0 }
 0x39d   : > { %v788_v22 = vmax.f32 %v783_v49, 0.0  ;;  %v1143_v52 = vpop.f32.mrb[11].mxu0 }
 0x39f   : > { %v789_v53 = vpack.c.bf16 %v788_v22, %v788_v22 }
 0x3a1   : > { %1161 = vmatmul.mubr.bf16.vlgmr.msra.gmra.mrb[8].mxu1 %v789_v53 }
 0x474   : > { %v892_v4 = vpop.f32.mrb[8].mxu1 }
 0x475   : > { %v893_v56 = vadd.f32 %v892_v4, %v809_v55  ;;  %v1162_v57 = vpop.f32.mrb[9].mxu1 }
 0x476   : > { %v895_v58 = vpop.f32.mrb[10].mxu1 }
 0x477   : > { %v1051_v59 = vmul.f32 -1.442695, %v893_v56  ;;  %v1163_v60 = vpop.f32.mrb[11].mxu1 }
 0x479   : > { %1290 = vpow2.f32 %v1051_v59 }
 0x483   : > { %v1291_v61 = vpop.eup %1290 }
 0x484   : > { %v901_v62 = vadd.f32 1.0, %v1291_v61 }
 0x486   : > { %1292 = vrcp.f32 %v901_v62 }
 0x490   : > { %v1293_v63 = vpop.eup %1292 }
 0x491   : > { %905 = vst [vmem:[%s1514_s7 + $0x8] sm:$0xff] %v1293_v63 }
 0x492   : > { %1335 = shalt.err (!%p1332_p8)
}
 0x493   : > { %s1336_s23 = scalar_lea.hbm %s1584_s30, 256  ;;  %s1340_s9 = scalar_lea.hbm %s1633_s4, 768 }
 0x494   : > { %p1337_p12 = scmp.ne.s32.totalorder %s1584_s30, %s1336_s23  ;;  %p1341_p1 = scmp.lt.u32.totalorder %s1584_s30, %s1633_s4 }
 0x495   : > { %p1342_p5 = scmp.lt.u32.totalorder %s1340_s9, %s1336_s23  ;;  %p1344_p9 = scmp.lt.u32.totalorder %s1336_s23, %s1584_s30 }
 0x496   : > { %p1338_p0 = pnand %p1337_p12, %p1645_p10 }
 0x497   : > { %p1343_p6 = por %p1342_p5, %p1341_p1 }
 0x498   : > { %p1339_p2 = pneg %p1338_p0 }
 0x499   : > { %p1345_p11 = por %p1344_p9, %p1343_p6 }
 0x49b   : > { %p1346_p13 = pnand %p1345_p11, %p1339_p2 }
 0x49d   : > { %1349 = shalt.err (!%p1346_p13)
}
 0x49e   : > { %1174 = dma.vmem_to_hbm [thread:$0]  (%p1645_p10), %s1586_s20, 256, %s1584_s30, %s907_s5  }
 0x49f PF: > { %p1186_p3 = scmp.ge.s32.totalorder %s1388_s18, 2  ;;  %s933_s12 = sand.u32 1, %s1376_s15  }
 0x4a0   : > { %p1646_p4 = scmp.ne.s32.totalorder %s1638_s26, 0  ;;  %s934_s13 = scalar_lea.sflag [#allocation5], %s933_s12 }
 0x4a2   : > { %p1181_p7 = pnand %p1186_p3, %p1646_p4 }
 0x4a4   : > { %1371 = dma.done.wait (!%p1181_p7), %s934_s13, 256  }
 0x4a5   : > { %1373 = vsyncadd (!%p1181_p7), %s934_s13, 4294967040  ;;  %p15_p8 = scmp.ge.s32.totalorder %s1447_s21, 5   ;;  %s1647_s15 = smov %s1380_s16 }
 0x4a6   : > { %s1648_s16 = smov %s1384_s17  ;;  %s1649_s17 = smov %s1458_s24 }
 0x4a7   : > { %s1650_s18 = smov %s1447_s21  ;;  %17 = sbr.rel (!%p15_p8) target bundleno = 4 (0x4), region = 80 }
 0x4ae   :  { %939 = vsyncpa [#allocation4], 1 }
 0x4af   :  { %941 = vsyncpa [#allocation4 + $0x1], 1 }
 0x4b0   :  { %942 = vsyncpa [#allocation5], 1 }
 0x4b1   :  { %944 = vsyncpa [#allocation5 + $0x1], 1 }

</bundles_post_ra>
